<compile_context>
chip_gen: v6e
topology: v6e:2x2x1
jax: 0.10.0
libtpu: 0.0.40
codegen_flags: <defaults>
</compile_context>

<pallas_src>
from typing import Dict, List, Union

import jax
import jax.numpy as jnp
from jax.experimental import pallas as pl
from jax.experimental.pallas import tpu as pltpu

HIDDEN_DIM = 1024


def _fused_upstream_kernel(x_ref, w1_ref, b1_ref, u_ref, c_ref,
                           hid_ref, feat_ref):
    """Fused forward for one row block (pure VPU, no MXU):
       hidden  = x * w1^T + b1        (broadcast FMA, exact f32)
       feature = x * u    + c         (rank-1 factorized Linear(H->H), exact f32)
    """
    x = x_ref[...]                                        # (tm, 1) float32
    hid_ref[...] = x * w1_ref[...] + b1_ref[...]          # (tm, H), 1 write/blk
    feat_ref[...] = x * u_ref[...] + c_ref[...]           # (tm, H), 1 write/blk


def fused_upstream(x, w1t, b1, u, c, *, tm):
    """x: (M, 1) f32; w1t/b1/u/c: (1, H) f32.  M must be a multiple of tm.
    Returns (hidden, feature), each (M, H) f32."""
    M = x.shape[0]
    H = w1t.shape[1]
    assert M % tm == 0, (M, tm)

    grid = (M // tm,)

    hidden, feature = pl.pallas_call(
        _fused_upstream_kernel,
        out_shape=(
            jax.ShapeDtypeStruct((M, H), jnp.float32),   # hidden
            jax.ShapeDtypeStruct((M, H), jnp.float32),   # feature
        ),
        grid_spec=pltpu.PrefetchScalarGridSpec(
            num_scalar_prefetch=0,
            grid=grid,
            in_specs=[
                pl.BlockSpec((tm, 1), lambda i: (i, 0)),   # x row-block column
                pl.BlockSpec((1, H), lambda i: (0, 0)),    # w1^T (resident, 4 KB)
                pl.BlockSpec((1, H), lambda i: (0, 0)),    # b1   (resident, 4 KB)
                pl.BlockSpec((1, H), lambda i: (0, 0)),    # u = w1^T @ W2^T
                pl.BlockSpec((1, H), lambda i: (0, 0)),    # c = b1 @ W2^T + b2
            ],
            out_specs=[
                pl.BlockSpec((tm, H), lambda i: (i, 0)),   # hidden  (lane-dense)
                pl.BlockSpec((tm, H), lambda i: (i, 0)),   # feature (lane-dense)
            ],
        ),
        compiler_params=pltpu.CompilerParams(
            # single row axis -> v7x megacore shards row blocks across 2 TCs
            dimension_semantics=("parallel",),
            # working set at tm=1024: 2 outputs x 2 buffers x 4 MB + tiny
            # constants ~= 16 MB; raise the scoped limit (v5e default is 16 MiB)
            # while staying well inside v7x's 64 MiB/TC physical VMEM.
            vmem_limit_bytes=32 * 1024 * 1024,
        ),
    )(x, w1t, b1, u, c)
    return hidden, feature


def _choose_tm(m_rows: int) -> int:
    """Largest row tile that amortizes per-grid-step overhead while keeping at
    least 2 grid steps (so v7x megacore can shard the row axis) and a modest
    VMEM working set."""
    for cand in (1024, 512, 256, 128):
        if m_rows >= 2 * cand:
            return cand
    return max(8, ((m_rows + 7) // 8) * 8)   # multiple of 8 (sublane rule)


class UpstreamExpertPallas:
    """JAX/Pallas re-implementation of the s3prl example UpstreamExpert."""

    def __init__(self, key=None):
        if key is None:
            key = jax.random.PRNGKey(0)
        k1, k2, k3, k4 = jax.random.split(key, 4)
        # PyTorch Linear stores weight as (out, in); we keep the transposed
        # (in, out) form since that is what the math consumes.
        self.w1t = jax.random.normal(k1, (1, HIDDEN_DIM), jnp.float32) * 0.02
        self.b1 = jax.random.normal(k2, (1, HIDDEN_DIM), jnp.float32) * 0.02
        self.w2t = jax.random.normal(k3, (HIDDEN_DIM, HIDDEN_DIM), jnp.float32) * 0.02
        self.b2 = jax.random.normal(k4, (1, HIDDEN_DIM), jnp.float32) * 0.02
        # Exact rank-1 factorization of the second Linear (computed once, f32,
        # by XLA): feature = x * u + c.  Note the K-sum over H is reassociated
        # here, so results are f32-close (not bit-identical) to torch.
        self.u = self.w1t @ self.w2t                      # (1, H)
        self.c = self.b1 @ self.w2t + self.b2             # (1, H)

    def get_downsample_rates(self, key: str) -> int:
        return 1

    def forward(self, wavs: List[jnp.ndarray]) -> Dict[str, Union[jnp.ndarray, list]]:
        # pad_sequence(batch_first=True) equivalent (zero-pad to max length)
        B = len(wavs)
        T = max(int(w.shape[0]) for w in wavs)
        padded = jnp.stack(
            [jnp.pad(w.astype(jnp.float32), (0, T - int(w.shape[0]))) for w in wavs],
            axis=0)                               # (B, T)

        M = B * T
        tm = _choose_tm(M)
        M_pad = ((M + tm - 1) // tm) * tm         # pad rows to a tile multiple
        x = padded.reshape(M, 1)
        if M_pad != M:
            x = jnp.pad(x, ((0, M_pad - M), (0, 0)))

        hidden_flat, feature_flat = fused_upstream(
            x, self.w1t, self.b1, self.u, self.c, tm=tm)

        hidden = hidden_flat[:M].reshape(B, T, HIDDEN_DIM)
        feature = feature_flat[:M].reshape(B, T, HIDDEN_DIM)

        # TODO(synk): hidden/feature stay f32 to match torch output dtype even
        # though bf16 writeback would halve the HBM-store-bound wall-clock.
        states = [hidden, feature]
        keys = ['hidden_states', 'PR', 'ASR', 'QbE', 'SID', 'ASV', 'SD',
                'ER', 'SF', 'SE', 'SS', 'secret']
        return {k: states for k in keys}

    __call__ = forward


def _reference_forward(wavs, w1t, b1, w2t, b2):
    """Plain-JAX (f32) reference reproducing the torch module semantics."""
    B = len(wavs)
    T = max(int(w.shape[0]) for w in wavs)
    padded = jnp.stack(
        [jnp.pad(w.astype(jnp.float32), (0, T - int(w.shape[0]))) for w in wavs],
        axis=0)[..., None]                         # (B, T, 1)
    hidden = padded @ w1t + b1                      # (B, T, H)
    feature = hidden @ w2t + b2                     # (B, T, H)
    return hidden, feature


if __name__ == "__main__":
    key = jax.random.PRNGKey(0)
    k_model, k_w1, k_w2 = jax.random.split(key, 3)

    model = UpstreamExpertPallas(k_model)

    # Two variable-length "waveforms" (small shapes), the module's List[Tensor] input.
    wav_a = jax.random.normal(k_w1, (16,), jnp.float32)
    wav_b = jax.random.normal(k_w2, (12,), jnp.float32)
    wavs = [wav_a, wav_b]

    out = model(wavs)
    hidden, feature = out["hidden_states"]
    jax.block_until_ready(hidden)
    jax.block_until_ready(feature)

    # correctness check against pure-JAX f32 reference
    ref_hidden, ref_feature = _reference_forward(
        wavs, model.w1t, model.b1, model.w2t, model.b2)
    assert hidden.shape == (2, 16, HIDDEN_DIM)
    assert feature.shape == (2, 16, HIDDEN_DIM)
    # hidden is computed fully in f32 -> essentially exact
    assert jnp.allclose(hidden, ref_hidden, atol=1e-5, rtol=1e-5)
    # feature uses the exact rank-1 factorization in f32; only the K-sum is
    # reassociated (precomputed u/c), so the tolerance is tight.
    assert jnp.allclose(feature, ref_feature, atol=1e-4, rtol=1e-4)

    print("KERNEL_OK")
</pallas_src>

<mosaic_0001>
module attributes {stable_mosaic.version = 11 : i64} {
  func.func @_fused_upstream_kernel(%arg0: i32, %arg1: memref<32x1xf32, #tpu.memory_space<vmem>>, %arg2: memref<1x1024xf32, #tpu.memory_space<vmem>>, %arg3: memref<1x1024xf32, #tpu.memory_space<vmem>>, %arg4: memref<1x1024xf32, #tpu.memory_space<vmem>>, %arg5: memref<1x1024xf32, #tpu.memory_space<vmem>>, %arg6: memref<32x1024xf32, #tpu.memory_space<vmem>>, %arg7: memref<32x1024xf32, #tpu.memory_space<vmem>>) attributes {dimension_semantics = [#tpu.dimension_semantics<parallel>], iteration_bounds = array<i64: 1>, scalar_prefetch = 0 : i64, scratch_operands = 0 : i64, tpu.core_type = #tpu.core_type<tc>, window_params = [{transform_indices = @transform_0, window_bounds = array<i64: 32, 1>}, {pipeline_mode = #tpu.pipeline_mode<synchronous>, transform_indices = @transform_1, window_bounds = array<i64: 1, 1024>}, {pipeline_mode = #tpu.pipeline_mode<synchronous>, transform_indices = @transform_2, window_bounds = array<i64: 1, 1024>}, {pipeline_mode = #tpu.pipeline_mode<synchronous>, transform_indices = @transform_3, window_bounds = array<i64: 1, 1024>}, {pipeline_mode = #tpu.pipeline_mode<synchronous>, transform_indices = @transform_4, window_bounds = array<i64: 1, 1024>}, {transform_indices = @transform_5, window_bounds = array<i64: 32, 1024>}, {transform_indices = @transform_6, window_bounds = array<i64: 32, 1024>}]} {
    %c0 = arith.constant 0 : index
    %c0_0 = arith.constant 0 : index
    %0 = vector.load %arg1[%c0, %c0_0] : memref<32x1xf32, #tpu.memory_space<vmem>>, vector<32x1xf32>
    %c0_1 = arith.constant 0 : index
    %c0_2 = arith.constant 0 : index
    %1 = vector.load %arg2[%c0_1, %c0_2] : memref<1x1024xf32, #tpu.memory_space<vmem>>, vector<1x1024xf32>
    %2 = vector.broadcast %0 : vector<32x1xf32> to vector<32x1024xf32>
    %3 = vector.broadcast %1 : vector<1x1024xf32> to vector<32x1024xf32>
    %4 = arith.mulf %2, %3 : vector<32x1024xf32>
    %c0_3 = arith.constant 0 : index
    %c0_4 = arith.constant 0 : index
    %5 = vector.load %arg3[%c0_3, %c0_4] : memref<1x1024xf32, #tpu.memory_space<vmem>>, vector<1x1024xf32>
    %6 = vector.broadcast %5 : vector<1x1024xf32> to vector<32x1024xf32>
    %7 = arith.addf %4, %6 : vector<32x1024xf32>
    %c0_5 = arith.constant 0 : index
    %c0_6 = arith.constant 0 : index
    %8 = vector.load %arg6[%c0_5, %c0_6] : memref<32x1024xf32, #tpu.memory_space<vmem>>, vector<32x1024xf32>
    tpu.vector_store %arg6[%c0_5, %c0_6], %7 {strides = array<i32>} : memref<32x1024xf32, #tpu.memory_space<vmem>>, vector<32x1024xf32>,
    %c0_7 = arith.constant 0 : index
    %c0_8 = arith.constant 0 : index
    %9 = vector.load %arg4[%c0_7, %c0_8] : memref<1x1024xf32, #tpu.memory_space<vmem>>, vector<1x1024xf32>
    %10 = vector.broadcast %0 : vector<32x1xf32> to vector<32x1024xf32>
    %11 = vector.broadcast %9 : vector<1x1024xf32> to vector<32x1024xf32>
    %12 = arith.mulf %10, %11 : vector<32x1024xf32>
    %c0_9 = arith.constant 0 : index
    %c0_10 = arith.constant 0 : index
    %13 = vector.load %arg5[%c0_9, %c0_10] : memref<1x1024xf32, #tpu.memory_space<vmem>>, vector<1x1024xf32>
    %14 = vector.broadcast %13 : vector<1x1024xf32> to vector<32x1024xf32>
    %15 = arith.addf %12, %14 : vector<32x1024xf32>
    %c0_11 = arith.constant 0 : index
    %c0_12 = arith.constant 0 : index
    %16 = vector.load %arg7[%c0_11, %c0_12] : memref<32x1024xf32, #tpu.memory_space<vmem>>, vector<32x1024xf32>
    tpu.vector_store %arg7[%c0_11, %c0_12], %15 {strides = array<i32>} : memref<32x1024xf32, #tpu.memory_space<vmem>>, vector<32x1024xf32>,
    return
  }
  func.func @transform_0(%arg0: i32) -> (i32, i32) {
    %c0_i32 = arith.constant 0 : i32
    %c0_i32_0 = arith.constant 0 : i32
    return %arg0, %c0_i32 : i32, i32
  }
  func.func @transform_1(%arg0: i32) -> (i32, i32) {
    %c0_i32 = arith.constant 0 : i32
    %c0_i32_0 = arith.constant 0 : i32
    %c0_i32_1 = arith.constant 0 : i32
    return %c0_i32, %c0_i32_0 : i32, i32
  }
  func.func @transform_2(%arg0: i32) -> (i32, i32) {
    %c0_i32 = arith.constant 0 : i32
    %c0_i32_0 = arith.constant 0 : i32
    %c0_i32_1 = arith.constant 0 : i32
    return %c0_i32, %c0_i32_0 : i32, i32
  }
  func.func @transform_3(%arg0: i32) -> (i32, i32) {
    %c0_i32 = arith.constant 0 : i32
    %c0_i32_0 = arith.constant 0 : i32
    %c0_i32_1 = arith.constant 0 : i32
    return %c0_i32, %c0_i32_0 : i32, i32
  }
  func.func @transform_4(%arg0: i32) -> (i32, i32) {
    %c0_i32 = arith.constant 0 : i32
    %c0_i32_0 = arith.constant 0 : i32
    %c0_i32_1 = arith.constant 0 : i32
    return %c0_i32, %c0_i32_0 : i32, i32
  }
  func.func @transform_5(%arg0: i32) -> (i32, i32) {
    %c0_i32 = arith.constant 0 : i32
    %c0_i32_0 = arith.constant 0 : i32
    return %arg0, %c0_i32 : i32, i32
  }
  func.func @transform_6(%arg0: i32) -> (i32, i32) {
    %c0_i32 = arith.constant 0 : i32
    %c0_i32_0 = arith.constant 0 : i32
    return %arg0, %c0_i32 : i32, i32
  }
}

</mosaic_0001>

<bundles_post_ra>
// kernel: tpu_custom_call.1
= control target key start
LH: loop header
LB: loop body
LE: loop exit
PB: predicated region body
PF: predicated region fallthrough
CT: control target
= control target key end

     0   :  { %12 = vsyncpa [#allocation3], 0  ;;  %v491_v2 = vmov 0   ;;  %s796_s0 = inlined_call_operand.vmem [shape: f32[32,1], index: 0, kind: input, shape index: {}]   ;;  %s797_s1 = inlined_call_operand.vmem [shape: f32[1,1024], index: 1, kind: input, shape index: {}]   ;;  %s798_s2 = inlined_call_operand.vmem [shape: f32[1,1024], index: 2, kind: input, shape index: {}]   ;;  %s799_s3 = inlined_call_operand.vmem [shape: f32[1,1024], index: 3, kind: input, shape index: {}]   ;;  %s800_s4 = inlined_call_operand.vmem [shape: f32[1,1024], index: 4, kind: input, shape index: {}]   ;;  %s801_s5 = inlined_call_operand.hbm [shape: f32[32,1024], index: 5, kind: output, shape index: {0}]   ;;  %s802_s6 = inlined_call_operand.hbm [shape: f32[32,1024], index: 6, kind: output, shape index: {1}]  }
   0x1   :  { %v26_v0 = vld [vmem:[%s796_s0 + $0x10] sm:$0xff]  ;;  %v24_v1 = vld [vmem:[%s796_s0] sm:$0xff]  ;;  %446 = vset.pattern.permute.xlu1 %v491_v2  ;;  %445 = vset.pattern.permute.xlu0 %v491_v2 }
   0x2   :  { %41 = vperm.xlu1 %446, %v26_v0   ;;  %31 = vperm.xlu0 %445, %v24_v1  }
   0x3   :  { %13 = vsyncpa [#allocation5], 0  ;;  %v27_v3 = vld [vmem:[%s796_s0 + $0x18] sm:$0xff]  ;;  %v25_v4 = vld [vmem:[%s796_s0 + $0x8] sm:$0xff]  ;;  %v50_v5 = vlaneseq  ;;  %s493_s10 = smov [#allocation4]  }
   0x4   :  { %v28_v11 = vld [vmem:[%s797_s1] sm:$0xff]  ;;  %s425_s11 = sshll.u32 %s493_s10, 4  ;;  %s426_s11 = int_to_ptr.vmem [resolvable:$true] %s425_s11 }
   0x5   :  { %v51_v6 = vshrl.u32 %v50_v5, 7  ;;  %v122_v16 = vld [vmem:[%s798_s2] sm:$0xff] }
   0x6   :  { %46 = vperm.xlu1 %446, %v27_v3   ;;  %36 = vperm.xlu0 %445, %v25_v4   ;;  %v228_v25 = vld [vmem:[%s799_s3] sm:$0xff]  ;;  %s492_s3 = smov [#allocation2]  }
   0x7   :  { %v52_v7 = vsub.s32 0, %v51_v6  ;;  %v56_v8 = vsub.s32 1, %v51_v6  ;;  %v60_v9 = vsub.s32 2, %v51_v6  ;;  %v64_v10 = vsub.s32 3, %v51_v6  ;;  %v302_v34 = vld [vmem:[%s800_s4] sm:$0xff]  ;;  %s413_s4 = sshll.u32 %s492_s3, 4  ;;  %s763_s4 = int_to_ptr.vmem [resolvable:$true] %s413_s4 }
   0x8   :  { %v68_v12 = vsub.s32 4, %v51_v6  ;;  %v72_v13 = vsub.s32 5, %v51_v6  ;;  %v76_v14 = vsub.s32 6, %v51_v6  ;;  %v80_v15 = vsub.s32 7, %v51_v6  ;;  %s447_s12 = scalar_lea.vmem %s763_s4, 4096  ;;  %p452_p1 = scmp.lt.s32.totalorder %s763_s4, %s763_s4 }
   0x9   :  { %v549_v17 = vrot.slane %v28_v11, %v52_v7  ;;  %v551_v18 = vrot.slane %v28_v11, %v56_v8  ;;  %v553_v19 = vrot.slane %v28_v11, %v60_v9  ;;  %v555_v20 = vrot.slane %v28_v11, %v64_v10  ;;  %p448_p0 = scmp.ne.s32.totalorder %s763_s4, %s447_s12  ;;  %p453_p2 = scmp.lt.s32.totalorder %s447_s12, %s447_s12 }
   0xa   :  { %v557_v21 = vrot.slane %v28_v11, %v68_v12  ;;  %v559_v22 = vrot.slane %v28_v11, %v72_v13  ;;  %v561_v23 = vrot.slane %v28_v11, %v76_v14  ;;  %v563_v24 = vrot.slane %v28_v11, %v80_v15 }
   0xb   :  { %v568_v26 = vrot.slane %v122_v16, %v52_v7  ;;  %v570_v27 = vrot.slane %v122_v16, %v56_v8  ;;  %v572_v28 = vrot.slane %v122_v16, %v60_v9  ;;  %v574_v29 = vrot.slane %v122_v16, %v64_v10  ;;  %p454_p3 = por %p453_p2, %p452_p1 }
   0xc   :  { %v576_v30 = vrot.slane %v122_v16, %v68_v12  ;;  %v578_v31 = vrot.slane %v122_v16, %v72_v13  ;;  %v580_v32 = vrot.slane %v122_v16, %v76_v14  ;;  %v582_v33 = vrot.slane %v122_v16, %v80_v15 }
   0xd   :  { %v587_v35 = vrot.slane %v228_v25, %v52_v7  ;;  %v589_v36 = vrot.slane %v228_v25, %v56_v8  ;;  %v591_v37 = vrot.slane %v228_v25, %v60_v9  ;;  %v593_v38 = vrot.slane %v228_v25, %v64_v10  ;;  %p455_p4 = pnand %p454_p3, %p448_p0 }
   0xe   :  { %v595_v39 = vrot.slane %v228_v25, %v68_v12  ;;  %v597_v40 = vrot.slane %v228_v25, %v72_v13  ;;  %v599_v41 = vrot.slane %v228_v25, %v76_v14  ;;  %v601_v42 = vrot.slane %v228_v25, %v80_v15 }
   0xf   :  { %v603_v43 = vrot.slane %v302_v34, %v52_v7  ;;  %v605_v44 = vrot.slane %v302_v34, %v56_v8  ;;  %v607_v45 = vrot.slane %v302_v34, %v60_v9  ;;  %v609_v46 = vrot.slane %v302_v34, %v64_v10 }
  0x10   :  { %v611_v48 = vrot.slane %v302_v34, %v68_v12  ;;  %v613_v49 = vrot.slane %v302_v34, %v72_v13  ;;  %v615_v50 = vrot.slane %v302_v34, %v76_v14  ;;  %v617_v51 = vrot.slane %v302_v34, %v80_v15 }
  0x7d   :  { %v42_v47 = vpop.permute.xlu1 %41  ;;  %v639_v8 = vpop.permute.xlu0 %31 }
  0x7e   :  { %v106_v52 = vmul.f32 %v549_v17, %v42_v47  ;;  %v107_v53 = vmul.f32 %v551_v18, %v42_v47  ;;  %v108_v54 = vmul.f32 %v553_v19, %v42_v47  ;;  %v109_v55 = vmul.f32 %v555_v20, %v42_v47 }
  0x7f   :  { %v110_v56 = vmul.f32 %v557_v21, %v42_v47  ;;  %v111_v57 = vmul.f32 %v559_v22, %v42_v47  ;;  %v112_v58 = vmul.f32 %v561_v23, %v42_v47  ;;  %v113_v59 = vmul.f32 %v563_v24, %v42_v47 }
  0x80   :  { %v180_v60 = vadd.f32 %v568_v26, %v106_v52  ;;  %v181_v61 = vadd.f32 %v570_v27, %v107_v53  ;;  %v182_v62 = vadd.f32 %v572_v28, %v108_v54  ;;  %v183_v63 = vadd.f32 %v574_v29, %v109_v55 }
  0x81   :  { %v184_v0 = vadd.f32 %v576_v30, %v110_v56  ;;  %v185_v1 = vadd.f32 %v578_v31, %v111_v57  ;;  %v186_v2 = vadd.f32 %v580_v32, %v112_v58  ;;  %v187_v3 = vadd.f32 %v582_v33, %v113_v59  ;;  %v653_v54 = vpop.permute.xlu1 %46 }
  0x82   :  { %212 = vst [vmem:[#allocation2 + $0x80] sm:$0xff] %v180_v60  ;;  %213 = vst [vmem:[#allocation2 + $0x88] sm:$0xff] %v181_v61  ;;  %v286_v4 = vmul.f32 %v587_v35, %v42_v47  ;;  %v287_v5 = vmul.f32 %v589_v36, %v42_v47  ;;  %v288_v6 = vmul.f32 %v591_v37, %v42_v47 }
  0x83   :  { %214 = vst [vmem:[#allocation2 + $0x90] sm:$0xff] %v182_v62  ;;  %215 = vst [vmem:[#allocation2 + $0x98] sm:$0xff] %v183_v63  ;;  %v289_v7 = vmul.f32 %v593_v38, %v42_v47  ;;  %v290_v9 = vmul.f32 %v595_v39, %v42_v47  ;;  %v291_v10 = vmul.f32 %v597_v40, %v42_v47 }
  0x84   :  { %216 = vst [vmem:[#allocation2 + $0xa0] sm:$0xff] %v184_v0  ;;  %217 = vst [vmem:[#allocation2 + $0xa8] sm:$0xff] %v185_v1  ;;  %v292_v11 = vmul.f32 %v599_v41, %v42_v47  ;;  %v293_v12 = vmul.f32 %v601_v42, %v42_v47  ;;  %v360_v13 = vadd.f32 %v603_v43, %v286_v4 }
  0x85   :  { %218 = vst [vmem:[#allocation2 + $0xb0] sm:$0xff] %v186_v2  ;;  %219 = vst [vmem:[#allocation2 + $0xb8] sm:$0xff] %v187_v3  ;;  %v361_v14 = vadd.f32 %v605_v44, %v287_v5  ;;  %v362_v15 = vadd.f32 %v607_v45, %v288_v6  ;;  %v363_v16 = vadd.f32 %v609_v46, %v289_v7 }
  0x86   :  { %v364_v25 = vadd.f32 %v611_v48, %v290_v9  ;;  %v365_v34 = vadd.f32 %v613_v49, %v291_v10  ;;  %v366_v52 = vadd.f32 %v615_v50, %v292_v11  ;;  %v367_v53 = vadd.f32 %v617_v51, %v293_v12  ;;  %392 = vst [vmem:[#allocation4 + $0x80] sm:$0xff] %v360_v13 }
  0x87   :  { %393 = vst [vmem:[#allocation4 + $0x88] sm:$0xff] %v361_v14  ;;  %394 = vst [vmem:[#allocation4 + $0x90] sm:$0xff] %v362_v15  ;;  %v90_v47 = vmul.f32 %v549_v17, %v639_v8  ;;  %v91_v55 = vmul.f32 %v551_v18, %v639_v8  ;;  %v92_v56 = vmul.f32 %v553_v19, %v639_v8 }
  0x88   :  { %395 = vst [vmem:[#allocation4 + $0x98] sm:$0xff] %v363_v16  ;;  %v93_v57 = vmul.f32 %v555_v20, %v639_v8  ;;  %396 = vst [vmem:[#allocation4 + $0xa0] sm:$0xff] %v364_v25  ;;  %v94_v58 = vmul.f32 %v557_v21, %v639_v8  ;;  %v95_v59 = vmul.f32 %v559_v22, %v639_v8 }
  0x89   :  { %397 = vst [vmem:[#allocation4 + $0xa8] sm:$0xff] %v365_v34  ;;  %398 = vst [vmem:[#allocation4 + $0xb0] sm:$0xff] %v366_v52  ;;  %v96_v60 = vmul.f32 %v561_v23, %v639_v8  ;;  %v97_v61 = vmul.f32 %v563_v24, %v639_v8  ;;  %v114_v62 = vmul.f32 %v549_v17, %v653_v54 }
  0x8a   :  { %399 = vst [vmem:[#allocation4 + $0xb8] sm:$0xff] %v367_v53  ;;  %v115_v63 = vmul.f32 %v551_v18, %v653_v54  ;;  %v116_v0 = vmul.f32 %v553_v19, %v653_v54  ;;  %v117_v1 = vmul.f32 %v555_v20, %v653_v54  ;;  %v118_v2 = vmul.f32 %v557_v21, %v653_v54 }
  0x8b   :  { %v119_v3 = vmul.f32 %v559_v22, %v653_v54  ;;  %v120_v4 = vmul.f32 %v561_v23, %v653_v54  ;;  %v121_v5 = vmul.f32 %v563_v24, %v653_v54  ;;  %v164_v6 = vadd.f32 %v568_v26, %v90_v47 }
  0x8c   :  { %v165_v7 = vadd.f32 %v570_v27, %v91_v55  ;;  %v166_v9 = vadd.f32 %v572_v28, %v92_v56  ;;  %v167_v10 = vadd.f32 %v574_v29, %v93_v57  ;;  %v168_v11 = vadd.f32 %v576_v30, %v94_v58 }
  0x8d   :  { %v169_v12 = vadd.f32 %v578_v31, %v95_v59  ;;  %v170_v13 = vadd.f32 %v580_v32, %v96_v60  ;;  %v171_v14 = vadd.f32 %v582_v33, %v97_v61  ;;  %v188_v15 = vadd.f32 %v568_v26, %v114_v62  ;;  %196 = vst [vmem:[#allocation2] sm:$0xff] %v164_v6 }
  0x8e   :  { %v189_v16 = vadd.f32 %v570_v27, %v115_v63  ;;  %v190_v25 = vadd.f32 %v572_v28, %v116_v0  ;;  %v191_v34 = vadd.f32 %v574_v29, %v117_v1  ;;  %197 = vst [vmem:[#allocation2 + $0x8] sm:$0xff] %v165_v7  ;;  %198 = vst [vmem:[#allocation2 + $0x10] sm:$0xff] %v166_v9 }
  0x8f   :  { %199 = vst [vmem:[#allocation2 + $0x18] sm:$0xff] %v167_v10  ;;  %v192_v52 = vadd.f32 %v576_v30, %v118_v2  ;;  %v193_v53 = vadd.f32 %v578_v31, %v119_v3  ;;  %v194_v47 = vadd.f32 %v580_v32, %v120_v4  ;;  %v195_v55 = vadd.f32 %v582_v33, %v121_v5 }
  0x90   :  { %200 = vst [vmem:[#allocation2 + $0x20] sm:$0xff] %v168_v11  ;;  %201 = vst [vmem:[#allocation2 + $0x28] sm:$0xff] %v169_v12  ;;  %v270_v56 = vmul.f32 %v587_v35, %v639_v8  ;;  %v271_v57 = vmul.f32 %v589_v36, %v639_v8  ;;  %v272_v58 = vmul.f32 %v591_v37, %v639_v8 }
  0x91   :  { %202 = vst [vmem:[#allocation2 + $0x30] sm:$0xff] %v170_v13  ;;  %203 = vst [vmem:[#allocation2 + $0x38] sm:$0xff] %v171_v14  ;;  %v273_v59 = vmul.f32 %v593_v38, %v639_v8  ;;  %v274_v60 = vmul.f32 %v595_v39, %v639_v8  ;;  %v275_v61 = vmul.f32 %v597_v40, %v639_v8 }
  0x92   :  { %220 = vst [vmem:[#allocation2 + $0xc0] sm:$0xff] %v188_v15  ;;  %221 = vst [vmem:[#allocation2 + $0xc8] sm:$0xff] %v189_v16  ;;  %v276_v62 = vmul.f32 %v599_v41, %v639_v8  ;;  %v277_v63 = vmul.f32 %v601_v42, %v639_v8  ;;  %v294_v0 = vmul.f32 %v587_v35, %v653_v54  ;;  %v37_v16 = vpop.permute.xlu0 %36 }
  0x93   :  { %222 = vst [vmem:[#allocation2 + $0xd0] sm:$0xff] %v190_v25  ;;  %223 = vst [vmem:[#allocation2 + $0xd8] sm:$0xff] %v191_v34  ;;  %v295_v1 = vmul.f32 %v589_v36, %v653_v54  ;;  %v296_v2 = vmul.f32 %v591_v37, %v653_v54  ;;  %v297_v3 = vmul.f32 %v593_v38, %v653_v54 }
  0x94   :  { %224 = vst [vmem:[#allocation2 + $0xe0] sm:$0xff] %v192_v52  ;;  %225 = vst [vmem:[#allocation2 + $0xe8] sm:$0xff] %v193_v53  ;;  %v298_v4 = vmul.f32 %v595_v39, %v653_v54  ;;  %v299_v5 = vmul.f32 %v597_v40, %v653_v54  ;;  %v300_v8 = vmul.f32 %v599_v41, %v653_v54 }
  0x95   :  { %226 = vst [vmem:[#allocation2 + $0xf0] sm:$0xff] %v194_v47  ;;  %227 = vst [vmem:[#allocation2 + $0xf8] sm:$0xff] %v195_v55  ;;  %v301_v6 = vmul.f32 %v601_v42, %v653_v54  ;;  %v344_v7 = vadd.f32 %v603_v43, %v270_v56  ;;  %v345_v9 = vadd.f32 %v605_v44, %v271_v57 }
  0x96   :  { %v346_v10 = vadd.f32 %v607_v45, %v272_v58  ;;  %v347_v11 = vadd.f32 %v609_v46, %v273_v59  ;;  %v348_v12 = vadd.f32 %v611_v48, %v274_v60  ;;  %v349_v13 = vadd.f32 %v613_v49, %v275_v61 }
  0x97   :  { %v350_v14 = vadd.f32 %v615_v50, %v276_v62  ;;  %v351_v15 = vadd.f32 %v617_v51, %v277_v63  ;;  %v368_v25 = vadd.f32 %v603_v43, %v294_v0  ;;  %v369_v54 = vadd.f32 %v605_v44, %v295_v1  ;;  %376 = vst [vmem:[#allocation4] sm:$0xff] %v344_v7 }
  0x98   :  { %v370_v34 = vadd.f32 %v607_v45, %v296_v2  ;;  %v371_v52 = vadd.f32 %v609_v46, %v297_v3  ;;  %377 = vst [vmem:[#allocation4 + $0x8] sm:$0xff] %v345_v9  ;;  %378 = vst [vmem:[#allocation4 + $0x10] sm:$0xff] %v346_v10  ;;  %v372_v53 = vadd.f32 %v611_v48, %v298_v4 }
  0x99   :  { %379 = vst [vmem:[#allocation4 + $0x18] sm:$0xff] %v347_v11  ;;  %v373_v47 = vadd.f32 %v613_v49, %v299_v5  ;;  %v374_v55 = vadd.f32 %v615_v50, %v300_v8  ;;  %v375_v56 = vadd.f32 %v617_v51, %v301_v6  ;;  %380 = vst [vmem:[#allocation4 + $0x20] sm:$0xff] %v348_v12 }
  0x9a   :  { %381 = vst [vmem:[#allocation4 + $0x28] sm:$0xff] %v349_v13  ;;  %382 = vst [vmem:[#allocation4 + $0x30] sm:$0xff] %v350_v14  ;;  %v98_v57 = vmul.f32 %v549_v17, %v37_v16  ;;  %v99_v58 = vmul.f32 %v551_v18, %v37_v16  ;;  %v100_v59 = vmul.f32 %v553_v19, %v37_v16 }
  0x9b   :  { %383 = vst [vmem:[#allocation4 + $0x38] sm:$0xff] %v351_v15  ;;  %400 = vst [vmem:[#allocation4 + $0xc0] sm:$0xff] %v368_v25  ;;  %v101_v60 = vmul.f32 %v555_v20, %v37_v16  ;;  %v102_v61 = vmul.f32 %v557_v21, %v37_v16  ;;  %v103_v62 = vmul.f32 %v559_v22, %v37_v16 }
  0x9c   :  { %401 = vst [vmem:[#allocation4 + $0xc8] sm:$0xff] %v369_v54  ;;  %402 = vst [vmem:[#allocation4 + $0xd0] sm:$0xff] %v370_v34  ;;  %v104_v63 = vmul.f32 %v561_v23, %v37_v16  ;;  %v105_v0 = vmul.f32 %v563_v24, %v37_v16  ;;  %v172_v17 = vadd.f32 %v568_v26, %v98_v57 }
  0x9d   :  { %403 = vst [vmem:[#allocation4 + $0xd8] sm:$0xff] %v371_v52  ;;  %404 = vst [vmem:[#allocation4 + $0xe0] sm:$0xff] %v372_v53  ;;  %v173_v18 = vadd.f32 %v570_v27, %v99_v58  ;;  %v174_v19 = vadd.f32 %v572_v28, %v100_v59  ;;  %v175_v20 = vadd.f32 %v574_v29, %v101_v60 }
  0x9e   :  { %405 = vst [vmem:[#allocation4 + $0xe8] sm:$0xff] %v373_v47  ;;  %406 = vst [vmem:[#allocation4 + $0xf0] sm:$0xff] %v374_v55  ;;  %v176_v1 = vadd.f32 %v576_v30, %v102_v61  ;;  %v177_v21 = vadd.f32 %v578_v31, %v103_v62  ;;  %v178_v22 = vadd.f32 %v580_v32, %v104_v63 }
  0x9f   :  { %407 = vst [vmem:[#allocation4 + $0xf8] sm:$0xff] %v375_v56  ;;  %v179_v23 = vadd.f32 %v582_v33, %v105_v0  ;;  %204 = vst [vmem:[#allocation2 + $0x40] sm:$0xff] %v172_v17  ;;  %v278_v24 = vmul.f32 %v587_v35, %v37_v16  ;;  %v279_v26 = vmul.f32 %v589_v36, %v37_v16 }
  0xa0   :  { %205 = vst [vmem:[#allocation2 + $0x48] sm:$0xff] %v173_v18  ;;  %206 = vst [vmem:[#allocation2 + $0x50] sm:$0xff] %v174_v19  ;;  %v280_v27 = vmul.f32 %v591_v37, %v37_v16  ;;  %v281_v28 = vmul.f32 %v593_v38, %v37_v16  ;;  %v282_v29 = vmul.f32 %v595_v39, %v37_v16 }
  0xa1   :  { %207 = vst [vmem:[#allocation2 + $0x58] sm:$0xff] %v175_v20  ;;  %208 = vst [vmem:[#allocation2 + $0x60] sm:$0xff] %v176_v1  ;;  %v283_v30 = vmul.f32 %v597_v40, %v37_v16  ;;  %v284_v31 = vmul.f32 %v599_v41, %v37_v16  ;;  %v285_v32 = vmul.f32 %v601_v42, %v37_v16 }
  0xa2   :  { %209 = vst [vmem:[#allocation2 + $0x68] sm:$0xff] %v177_v21  ;;  %210 = vst [vmem:[#allocation2 + $0x70] sm:$0xff] %v178_v22  ;;  %v352_v33 = vadd.f32 %v603_v43, %v278_v24  ;;  %v353_v35 = vadd.f32 %v605_v44, %v279_v26  ;;  %v354_v36 = vadd.f32 %v607_v45, %v280_v27 }
  0xa3   :  { %211 = vst [vmem:[#allocation2 + $0x78] sm:$0xff] %v179_v23  ;;  %v355_v37 = vadd.f32 %v609_v46, %v281_v28 }
  0xa4   :  { %458 = shalt.err (!%p455_p4)
}
  0xa5   :  { %s494_s13 = smov 1024   ;;  %s495_s14 = smov 64   ;;  %v356_v38 = vadd.f32 %v611_v48, %v282_v29  ;;  %v357_v39 = vadd.f32 %v613_v49, %v283_v30  ;;  %v358_v40 = vadd.f32 %v615_v50, %v284_v31  ;;  %v359_v41 = vadd.f32 %v617_v51, %v285_v32  ;;  %384 = vst [vmem:[#allocation4 + $0x40] sm:$0xff] %v352_v33 }
  0xa6   :  { %419 = dma.vmem_to_hbm [thread:$0]  %s763_s4, 4096, %s801_s5, [#allocation3], %s494_s13, %s494_s13, %s495_s14   ;;  %385 = vst [vmem:[#allocation4 + $0x48] sm:$0xff] %v353_v35  ;;  %386 = vst [vmem:[#allocation4 + $0x50] sm:$0xff] %v354_v36 }
  0xa7   :  { %387 = vst [vmem:[#allocation4 + $0x58] sm:$0xff] %v355_v37  ;;  %388 = vst [vmem:[#allocation4 + $0x60] sm:$0xff] %v356_v38  ;;  %s467_s17 = scalar_lea.vmem %s426_s11, 4096  ;;  %p472_p6 = scmp.lt.s32.totalorder %s426_s11, %s426_s11 }
  0xa8   :  { %389 = vst [vmem:[#allocation4 + $0x68] sm:$0xff] %v357_v39  ;;  %390 = vst [vmem:[#allocation4 + $0x70] sm:$0xff] %v358_v40  ;;  %p468_p5 = scmp.ne.s32.totalorder %s426_s11, %s467_s17  ;;  %p473_p7 = scmp.lt.s32.totalorder %s467_s17, %s467_s17 }
  0xa9   :  { %391 = vst [vmem:[#allocation4 + $0x78] sm:$0xff] %v359_v41 }
  0xaa   :  { %p474_p8 = por %p473_p7, %p472_p6 }
  0xac   :  { %p475_p9 = pnand %p474_p8, %p468_p5 }
  0xae   :  { %478 = shalt.err (!%p475_p9)
}
  0xaf   :  { %431 = dma.vmem_to_hbm [thread:$0]  %s426_s11, 4096, %s802_s6, [#allocation5], %s494_s13, %s494_s13, %s495_s14  }
  0xb0   :  { %487 = dma.done.wait [#allocation3], 4096  }
  0xb1   :  { %488 = vsyncadd [#allocation3], 4294963200 }
  0xb2   :  { %489 = dma.done.wait [#allocation5], 4096  }
  0xb3   :  { %490 = vsyncadd [#allocation5], 4294963200 }
  0xb4   :  { %438 = vsyncpa [#allocation3], 1 }
  0xb5   :  { %439 = vsyncpa [#allocation5], 1 }

</bundles_post_ra>
